<compile_context>
chip_gen: v5e
topology: v5e:2x2
jax: 0.10.0
libtpu: 0.0.40
codegen_flags: <defaults>
</compile_context>

<pallas_src>
import functools
from typing import List, NamedTuple, Sequence, Tuple

import jax
import jax.numpy as jnp
from jax.experimental import pallas as pl
from jax.experimental.pallas import tpu as pltpu


def _round_up(x: int, m: int) -> int:
    return ((x + m - 1) // m) * m


def _default_heads_per_group(c_pad: int) -> int:
    """Pack 2 heads per 256-lane output block only on >=256-wide-MXU chips."""
    if 2 * c_pad > 256:
        return 1
    try:
        kind = jax.devices()[0].device_kind.lower()
    except Exception:
        kind = ""
    return 2 if ("v6" in kind or "v7" in kind) else 1


# ----------------------------------------------------------------------------
# Fused kernel
#   gid_ref : SMEM (num_steps,) int32   head-group id for this grid step
#   kin_ref : SMEM (num_steps,) int32   K-tile index within that group
#   x_ref   : VMEM (tile_b, tile_k)     bf16
#   w_ref   : VMEM (tile_k, gcols)      bf16   (rows >= each head's D_i zeroed)
#   b_ref   : VMEM (1, gcols)           f32
#   o_ref   : VMEM (tile_b, gcols)      f32    resident output block (accumulator)
# ----------------------------------------------------------------------------
def _mrl_fused_kernel(gid_ref, kin_ref, x_ref, w_ref, b_ref, o_ref):
    del gid_ref  # only needed by the index_maps
    s = pl.program_id(1)

    # First K tile of this head group: seed the resident output block with the
    # bias (folds the bias add into the accumulator init; no scratch buffer).
    @pl.when(kin_ref[s] == 0)
    def _init():
        o_ref[...] = jnp.broadcast_to(b_ref[...], o_ref.shape)

    o_ref[...] += jnp.dot(
        x_ref[...], w_ref[...], preferred_element_type=jnp.float32
    )


# ----------------------------------------------------------------------------
# Parameters
# ----------------------------------------------------------------------------
class PackedParams(NamedTuple):
    w_stack: jax.Array     # (G, D_pad, gcols) bf16, zero-padded per head
    b_stack: jax.Array     # (G, 1, gcols)     f32, zero-padded columns
    gid: jax.Array         # (num_steps,)      int32 group id per grid step
    kin: jax.Array         # (num_steps,)      int32 K tile within group
    num_classes: int
    c_pad: int
    tile_k: int
    n_heads: int
    heads_per_group: int


def init_multi_head_nested_linear(
    key: jax.Array, nesting_list: Sequence[int], num_classes: int
) -> List[Tuple[jax.Array, jax.Array]]:
    """Per-head params mirroring nn.Linear default init.

    Head i: weight (D_i, num_classes) (pre-transposed for x @ W), bias (num_classes,).
    """
    params = []
    for i, num_feat in enumerate(nesting_list):
        kw, kb = jax.random.split(jax.random.fold_in(key, i))
        bound = 1.0 / float(num_feat) ** 0.5
        w = jax.random.uniform(
            kw, (int(num_feat), num_classes), jnp.float32, minval=-bound, maxval=bound
        )
        b = jax.random.uniform(
            kb, (num_classes,), jnp.float32, minval=-bound, maxval=bound
        )
        params.append((w, b))
    return params


def pack_params(
    params: Sequence[Tuple[jax.Array, jax.Array]],
    nesting_list: Sequence[int],
    num_classes: int,
    *,
    tile_k: int = None,
    lane: int = 128,
    heads_per_group: int = None,
) -> PackedParams:
    """Stack + zero-pad per-head weights once and build the flattened
    (group, k) grid schedule (done outside the hot path)."""
    H = len(nesting_list)
    dims = [int(d) for d in nesting_list]
    assert H == len(params) and H >= 1
    assert all(d >= 1 for d in dims), "nesting dims must be >= 1"

    d_max = max(dims)
    if tile_k is None:
        tile_k = min(_round_up(d_max, 128), 512)
    assert tile_k % 128 == 0, "tile_k must be a multiple of 128"
    d_pad = _round_up(d_max, tile_k)
    c_pad = _round_up(num_classes, lane)

    if heads_per_group is None:
        heads_per_group = _default_heads_per_group(c_pad)
    hpg = max(1, int(heads_per_group))
    G = -(-H // hpg)
    gcols = hpg * c_pad

    w_stack = jnp.zeros((G, d_pad, gcols), jnp.bfloat16)
    b_stack = jnp.zeros((G, 1, gcols), jnp.float32)
    group_dims = [0] * G
    for i, (w, b) in enumerate(params):
        di = dims[i]
        g, j = divmod(i, hpg)
        c0 = j * c_pad
        w_stack = w_stack.at[g, :di, c0:c0 + num_classes].set(w.astype(jnp.bfloat16))
        b_stack = b_stack.at[g, 0, c0:c0 + num_classes].set(b.astype(jnp.float32))
        group_dims[g] = max(group_dims[g], di)

    # Flattened schedule: only K tiles overlapping a group's nested prefix.
    gid, kin = [], []
    for g in range(G):
        nk = -(-group_dims[g] // tile_k)
        for k in range(nk):
            gid.append(g)
            kin.append(k)

    return PackedParams(
        w_stack=w_stack,
        b_stack=b_stack,
        gid=jnp.asarray(gid, jnp.int32),
        kin=jnp.asarray(kin, jnp.int32),
        num_classes=int(num_classes),
        c_pad=int(c_pad),
        tile_k=int(tile_k),
        n_heads=int(H),
        heads_per_group=int(hpg),
    )


# ----------------------------------------------------------------------------
# Forward
# ----------------------------------------------------------------------------
@functools.partial(
    jax.jit, static_argnames=("num_classes", "c_pad", "tile_k", "n_heads")
)
def _mrl_forward(x, w_stack, b_stack, gid, kin, *, num_classes, c_pad, tile_k, n_heads):
    B, D = x.shape
    G, d_pad, gcols = w_stack.shape
    num_steps = int(gid.shape[0])

    # Batch tiling: up to 512 rows per block, multiple of 16 (bf16 sublanes).
    tile_b = 512 if B > 512 else _round_up(B, 16)
    b_pad = _round_up(B, tile_b)

    # Prepare x once: bf16 (skip if already bf16), clip/zero-pad features to
    # d_pad (weight rows there are zero so padding is exact), zero-pad batch.
    x_p = x if x.dtype == jnp.bfloat16 else x.astype(jnp.bfloat16)
    if D > d_pad:
        x_p = x_p[:, :d_pad]
    elif D < d_pad:
        x_p = jnp.pad(x_p, ((0, 0), (0, d_pad - D)))
    if b_pad > B:
        x_p = jnp.pad(x_p, ((0, b_pad - B), (0, 0)))

    grid = (b_pad // tile_b, num_steps)

    # index_maps receive the scalar-prefetch refs (gid, kin in SMEM) last.
    def x_map(b, s, gid_ref, kin_ref):
        return (b, kin_ref[s])

    def w_map(b, s, gid_ref, kin_ref):
        return (gid_ref[s], kin_ref[s], 0)

    def bias_map(b, s, gid_ref, kin_ref):
        return (gid_ref[s], 0, 0)

    def o_map(b, s, gid_ref, kin_ref):
        return (b, gid_ref[s])

    # VMEM budget: double-buffered blocks + headroom, capped for v7x (64 MiB).
    blk_bytes = (tile_b * tile_k * 2) + (tile_k * gcols * 2) + (tile_b * gcols * 4) + gcols * 4
    vmem_limit = int(min(48 << 20, max(32 << 20, 2 * blk_bytes + (8 << 20))))

    slab = pl.pallas_call(
        _mrl_fused_kernel,
        out_shape=jax.ShapeDtypeStruct((b_pad, G * gcols), jnp.float32),
        grid_spec=pltpu.PrefetchScalarGridSpec(
            num_scalar_prefetch=2,
            grid=grid,
            in_specs=[
                pl.BlockSpec((tile_b, tile_k), x_map),
                pl.BlockSpec((None, tile_k, gcols), w_map),
                pl.BlockSpec((None, 1, gcols), bias_map),
            ],
            out_specs=pl.BlockSpec((tile_b, gcols), o_map),
        ),
        compiler_params=pltpu.CompilerParams(
            dimension_semantics=("parallel", "arbitrary"),
            vmem_limit_bytes=vmem_limit,
        ),
    )(gid, kin, x_p, w_stack, b_stack)

    # Head i lives at slab columns [i * c_pad, i * c_pad + num_classes)
    # regardless of head grouping (groups are contiguous along the lane axis).
    return tuple(
        jax.lax.slice(slab, (0, i * c_pad), (B, i * c_pad + num_classes))
        for i in range(n_heads)
    )


def multi_head_nested_linear(x: jax.Array, packed: PackedParams) -> Tuple[jax.Array, ...]:
    """Forward pass: tuple of (B, num_classes) f32 logits, one per nesting size."""
    return _mrl_forward(
        x,
        packed.w_stack,
        packed.b_stack,
        packed.gid,
        packed.kin,
        num_classes=packed.num_classes,
        c_pad=packed.c_pad,
        tile_k=packed.tile_k,
        n_heads=packed.n_heads,
    )


# ----------------------------------------------------------------------------
# Demo / smoke test
# ----------------------------------------------------------------------------
if __name__ == "__main__":
    key = jax.random.PRNGKey(0)
    k_x, k_p = jax.random.split(key)

    batch = 8
    hidden = 32
    num_classes = 16
    nesting_list = (8, 16, 32)   # nested Matryoshka dims (<= hidden)

    x = jax.random.normal(k_x, (batch, hidden), dtype=jnp.float32)
    params = init_multi_head_nested_linear(k_p, nesting_list, num_classes)
    packed = pack_params(params, nesting_list, num_classes)

    logits = multi_head_nested_linear(x, packed)
    logits = jax.block_until_ready(logits)

    # References: (a) same bf16-rounded inputs, f32 accumulation (tight check),
    #             (b) original f32 module semantics (loose check).
    x_bf = x.astype(jnp.bfloat16).astype(jnp.float32)
    for i, num_feat in enumerate(nesting_list):
        w, b = params[i]
        w_bf = w.astype(jnp.bfloat16).astype(jnp.float32)
        ref_bf = x_bf[:, :num_feat] @ w_bf + b
        ref_f32 = x[:, :num_feat] @ w + b
        assert logits[i].shape == (batch, num_classes), logits[i].shape
        assert jnp.allclose(logits[i], ref_bf, atol=1e-2, rtol=1e-2), f"head {i} (bf16 ref)"
        assert jnp.allclose(logits[i], ref_f32, atol=5e-2, rtol=5e-2), f"head {i} (f32 ref)"

    print("KERNEL_OK")
</pallas_src>

<mosaic_0001>
module attributes {stable_mosaic.version = 11 : i64} {
  func.func @_mrl_fused_kernel(%arg0: i32, %arg1: i32, %arg2: memref<3xi32, #tpu.memory_space<smem>>, %arg3: memref<3xi32, #tpu.memory_space<smem>>, %arg4: memref<16x128xbf16, #tpu.memory_space<vmem>>, %arg5: memref<1x128x128xbf16, #tpu.memory_space<vmem>>, %arg6: memref<1x1x128xf32, #tpu.memory_space<vmem>>, %arg7: memref<16x128xf32, #tpu.memory_space<vmem>>) attributes {dimension_semantics = [#tpu.dimension_semantics<parallel>, #tpu.dimension_semantics<arbitrary>], iteration_bounds = array<i64: 1, 3>, scalar_prefetch = 2 : i64, scratch_operands = 0 : i64, tpu.core_type = #tpu.core_type<tc>, window_params = [{transform_indices = @transform_0, window_bounds = array<i64: 16, 128>}, {transform_indices = @transform_1, window_bounds = array<i64: 1, 128, 128>}, {transform_indices = @transform_2, window_bounds = array<i64: 1, 1, 128>}, {transform_indices = @transform_3, window_bounds = array<i64: 16, 128>}]} {
    %0 = arith.index_cast %arg1 : i32 to index
    %1 = memref.load %arg3[%0] : memref<3xi32, #tpu.memory_space<smem>>
    %c0_i32 = arith.constant 0 : i32
    %2 = arith.cmpi eq, %1, %c0_i32 : i32
    %3 = arith.extui %2 : i1 to i32
    %c0_i32_0 = arith.constant 0 : i32
    %4 = arith.cmpi ne, %3, %c0_i32_0 : i32
    scf.if %4 {
      %c0_9 = arith.constant 0 : index
      %c0_10 = arith.constant 0 : index
      %c0_11 = arith.constant 0 : index
      %12 = vector.load %arg6[%c0_9, %c0_10, %c0_11] : memref<1x1x128xf32, #tpu.memory_space<vmem>>, vector<1x1x128xf32>
      %13 = vector.shape_cast %12 : vector<1x1x128xf32> to vector<1x128xf32>
      %14 = vector.shape_cast %13 : vector<1x128xf32> to vector<1x128xf32>
      %15 = vector.broadcast %14 : vector<1x128xf32> to vector<16x128xf32>
      %c0_12 = arith.constant 0 : index
      %c0_13 = arith.constant 0 : index
      %16 = vector.load %arg7[%c0_12, %c0_13] : memref<16x128xf32, #tpu.memory_space<vmem>>, vector<16x128xf32>
      tpu.vector_store %arg7[%c0_12, %c0_13], %15 {strides = array<i32>} : memref<16x128xf32, #tpu.memory_space<vmem>>, vector<16x128xf32>,
    } else {
    }
    %c0 = arith.constant 0 : index
    %c0_1 = arith.constant 0 : index
    %5 = vector.load %arg7[%c0, %c0_1] : memref<16x128xf32, #tpu.memory_space<vmem>>, vector<16x128xf32>
    %c0_2 = arith.constant 0 : index
    %c0_3 = arith.constant 0 : index
    %6 = vector.load %arg4[%c0_2, %c0_3] : memref<16x128xbf16, #tpu.memory_space<vmem>>, vector<16x128xbf16>
    %c0_4 = arith.constant 0 : index
    %c0_5 = arith.constant 0 : index
    %c0_6 = arith.constant 0 : index
    %7 = vector.load %arg5[%c0_4, %c0_5, %c0_6] : memref<1x128x128xbf16, #tpu.memory_space<vmem>>, vector<1x128x128xbf16>
    %8 = vector.shape_cast %7 : vector<1x128x128xbf16> to vector<128x128xbf16>
    %cst = arith.constant dense<0.000000e+00> : vector<16x128xf32>
    %9 = tpu.matmul %6, %8, %cst {dimension_numbers = #tpu.dot_dimension_numbers<[1], [0], [0], [1], [0, 0, 1, 1], [], []>} : vector<16x128xbf16>, vector<128x128xbf16>, vector<16x128xf32> -> vector<16x128xf32>
    %10 = arith.addf %5, %9 : vector<16x128xf32>
    %c0_7 = arith.constant 0 : index
    %c0_8 = arith.constant 0 : index
    %11 = vector.load %arg7[%c0_7, %c0_8] : memref<16x128xf32, #tpu.memory_space<vmem>>, vector<16x128xf32>
    tpu.vector_store %arg7[%c0_7, %c0_8], %10 {strides = array<i32>} : memref<16x128xf32, #tpu.memory_space<vmem>>, vector<16x128xf32>,
    return
  }
  func.func @transform_0(%arg0: i32, %arg1: i32, %arg2: memref<3xi32, #tpu.memory_space<smem>>, %arg3: memref<3xi32, #tpu.memory_space<smem>>) -> (i32, i32) {
    %0 = arith.index_cast %arg1 : i32 to index
    %1 = memref.load %arg3[%0] : memref<3xi32, #tpu.memory_space<smem>>
    %c0_i32 = arith.constant 0 : i32
    return %arg0, %1 : i32, i32
  }
  func.func @transform_1(%arg0: i32, %arg1: i32, %arg2: memref<3xi32, #tpu.memory_space<smem>>, %arg3: memref<3xi32, #tpu.memory_space<smem>>) -> (i32, i32, i32) {
    %0 = arith.index_cast %arg1 : i32 to index
    %1 = memref.load %arg2[%0] : memref<3xi32, #tpu.memory_space<smem>>
    %2 = arith.index_cast %arg1 : i32 to index
    %3 = memref.load %arg3[%2] : memref<3xi32, #tpu.memory_space<smem>>
    %c0_i32 = arith.constant 0 : i32
    %c0_i32_0 = arith.constant 0 : i32
    return %1, %3, %c0_i32 : i32, i32, i32
  }
  func.func @transform_2(%arg0: i32, %arg1: i32, %arg2: memref<3xi32, #tpu.memory_space<smem>>, %arg3: memref<3xi32, #tpu.memory_space<smem>>) -> (i32, i32, i32) {
    %0 = arith.index_cast %arg1 : i32 to index
    %1 = memref.load %arg2[%0] : memref<3xi32, #tpu.memory_space<smem>>
    %c0_i32 = arith.constant 0 : i32
    %c0_i32_0 = arith.constant 0 : i32
    %c0_i32_1 = arith.constant 0 : i32
    return %1, %c0_i32, %c0_i32_0 : i32, i32, i32
  }
  func.func @transform_3(%arg0: i32, %arg1: i32, %arg2: memref<3xi32, #tpu.memory_space<smem>>, %arg3: memref<3xi32, #tpu.memory_space<smem>>) -> (i32, i32) {
    %0 = arith.index_cast %arg1 : i32 to index
    %1 = memref.load %arg2[%0] : memref<3xi32, #tpu.memory_space<smem>>
    %c0_i32 = arith.constant 0 : i32
    return %arg0, %1 : i32, i32
  }
}

</mosaic_0001>

<bundles_post_ra>
// kernel: _mrl_forward.1
= control target key start
LH: loop header
LB: loop body
LE: loop exit
PB: predicated region body
PF: predicated region fallthrough
CT: control target
= control target key end

     0   :  { %s816_s24 = smov [#allocation3]   ;;  %s817_s25 = smov [#allocation4]   ;;  %s1037_s0 = inlined_call_operand.vmem [shape: s32[3], index: 0, kind: input, shape index: {}]   ;;  %s1038_s2 = inlined_call_operand.vmem [shape: bf16[16,128], index: 2, kind: input, shape index: {}]   ;;  %s1039_s3 = inlined_call_operand.hbm [shape: bf16[3,128,128], index: 3, kind: input, shape index: {}]   ;;  %s1040_s4 = inlined_call_operand.vmem [shape: f32[3,1,128], index: 4, kind: input, shape index: {}]   ;;  %s1041_s5 = inlined_call_operand.vmem [shape: f32[16,384], index: 5, kind: output, shape index: {}]   ;;  %s1042_s1 = inlined_call_operand.vmem [shape: s32[3], index: 1, kind: input, shape index: {}]  }
   0x1   :  { %s11_s20 = sshll.u32 %s1037_s0, 4  ;;  %s16_s23 = sshll.u32 %s1042_s1, 4  ;;  %s12_s20 = int_to_ptr.vmem [resolvable:$true] %s11_s20  ;;  %s17_s23 = int_to_ptr.vmem [resolvable:$true] %s16_s23 }
   0x2   :  { %14 = dma.vmem_to_smem %s12_s20, 16, %s816_s24, [#allocation2] }
   0x3   :  { %19 = dma.vmem_to_smem %s17_s23, 16, %s817_s25, [#allocation2] }
   0x4   :  { %778 = dma.done.wait [#allocation2], 32 }
   0x5   :  { %779 = vsyncadd [#allocation2], 4294967264 }
   0x6   :  { %22 = sfence }
   0x7   :  { %23 = vsyncpa [#allocation6], 0 }
   0x8   :  { %25 = vsyncpa [#allocation6 + $0x1], 0  ;;  %s856_s26 = smov 0   ;;  %s858_s27 = smov 0  }
   0x9   :  { %s860_s0 = smov 0   ;;  %s862_s28 = smov 0  }
   0xa   :  { %s864_s1 = smov 0   ;;  %s866_s29 = smov 0  }
   0xb   :  { %s868_s30 = smov 0   ;;  %s870_s6 = smov 0  }
   0xc LB: > { %1046 = sst [smem:[#allocation14_spill]] %s802_s1  ;;  %s40_s7 = sadd.s32 1, %s810_s30  ;;  %s814_s6 = sphi %s870_s6, %s31_s6   ;;  %s810_s30 = sphi %s868_s30, %s1058_s30   ;;  %s806_s29 = sphi %s866_s29, %s1057_s29   ;;  %s802_s1 = sphi %s864_s1, %s1056_s1   ;;  %s798_s28 = sphi %s862_s28, %s1062_s28   ;;  %s794_s0 = sphi %s860_s0, %s1061_s0   ;;  %s790_s27 = sphi %s858_s27, %s1060_s27   ;;  %s786_s26 = sphi %s856_s26, %s1059_s26  }
   0xd   : > { %1047 = sst [smem:[#allocation15_spill]] %s810_s30  ;;  %p41_p0 = scmp.ge.s32.totalorder %s40_s7, 3 }
   0xe   : > { %s546_s8 = sadd.s32 4294967295, %s814_s6   ;;  %s77_s9 = sld [smem:[#allocation3 + %s810_s30]] }
   0xf   : > { %s1064_s7 = smov (%p41_p0, %s40_s7), 0  ;;  %s78_s10 = sld [smem:[#allocation4 + %s810_s30]] }
  0x10   : > { %1048 = sst [smem:[#allocation16_spill]] %s1064_s7  ;;  %p93_p1 = scmp.ne.s32.totalorder %s802_s1, %s798_s28 }
  0x11   : > { %s79_s11 = sld [smem:[#allocation3 + %s1064_s7]]  ;;  %p99_p2 = scmp.ne.s32.totalorder %s798_s28, %s794_s0 }
  0x12   : > { %s80_s12 = sld [smem:[#allocation4 + %s1064_s7]]  ;;  %p94_p3 = scmp.eq.s32.totalorder %s814_s6, 0 }
  0x13   : > { %p100_p4 = scmp.eq.s32.totalorder %s546_s8, 0  ;;  %s137_s13 = sld [smem:[#allocation3 + %s810_s30]] }
  0x14   : > { %s86_s14 = sadd.s32 1, %s802_s1  ;;  %s138_s15 = sld [smem:[#allocation3 + %s1064_s7]] }
  0x15   : > { %p909_p5 = por %p100_p4, %p99_p2  ;;  %p154_p6 = scmp.ne.s32.totalorder %s790_s27, %s786_s26 }
  0x16   : > { %p155_p7 = scmp.eq.s32.totalorder %s546_s8, 2  ;;  %p918_p8 = por %p94_p3, %p93_p1 }
  0x17   : > { %s81_s17 = ssub.s32 %s77_s9, %s79_s11  ;;  %s144_s22 = sadd.s32 1, %s790_s27 }
  0x18   : > { %s82_s19 = ssub.s32 %s78_s10, %s80_s12  ;;  %p922_p9 = por %p155_p7, %p154_p6 }
  0x19   : > { %s83_s21 = sor.u32 %s82_s19, %s81_s17  ;;  %p622_p12 = scmp.lt.s32.totalorder %s814_s6, 3 }
  0x1a   : > { %p84_p10 = scmp.eq.s32.totalorder %s83_s21, 0  ;;  %s140_s23 = ssub.s32 %s137_s13, %s138_s15 }
  0x1b   : > { %p142_p11 = scmp.eq.s32.totalorder %s140_s23, 0  ;;  %s195_s0 = sand.u32 1, %s802_s1  }
  0x1c   : > { %s929_s24 = scalar_select %p84_p10, %s802_s1, %s86_s14  }
  0x1d   : > { %s932_s25 = scalar_select %p142_p11, %s790_s27, %s144_s22  }
  0x1e   : > { %1052 = sst [smem:[#allocation17_spill]] %s929_s24  ;;  %p937_p13 = pnand %p622_p12, %p918_p8 }
  0x1f   : > { %s608_s9 = scalar_select %p918_p8, [#allocation3], [#allocation8] }
  0x20   : > { %s609_s10 = scalar_select %p918_p8, %s810_s30, 0 }
  0x21   : > { %s1066_s9 = smov (!%p622_p12, %s608_s9), [#allocation10]  ;;  %s550_s13 = sshll.u32 %s195_s0, 6 }
  0x22   : > { %s1068_s10 = smov (!%p622_p12, %s609_s10), 0  ;;  %p554_p0 = scmp.ge.s32.totalorder %s814_s6, 1 }
  0x23   : > { %s610_s11 = scalar_select %p918_p8, [#allocation4], [#allocation9] }
  0x24   : > { %s200_s12 = sld [smem:[%s1066_s9 + %s1068_s10]]  ;;  %p227_p1 = scmp.lt.s32.totalorder %s814_s6, 4 }
  0x25   : > { %s1070_s11 = smov (!%p622_p12, %s610_s11), [#allocation11]  ;;  %s199_s19 = scalar_lea.vmem [#allocation5], %s550_s13 }
  0x26   : > { %s201_s14 = sld [smem:[%s1070_s11 + %s1068_s10]]  ;;  %p950_p2 = pnand %p554_p0, %p227_p1 }
  0x27   : > { %s954_s21 = sshll.u32 %s199_s19, 4  ;;  %s196_s30 = scalar_lea.sflag [#allocation6], %s195_s0  ;;  %s212_s21 = int_to_ptr.vmem [resolvable:$true] %s954_s21 }
  0x28   : > { %p720_p4 = pneg %p937_p13 }
  0x2a   : > { %s552_s17 = sshll.u32 %s200_s12, 4 }
  0x2c   : > { %s551_s22 = sshll.u32 %s201_s14, 4  ;;  %s723_s14 = scalar_lea.hbm %s1039_s3, 192 }
  0x2d   : > { %s206_s23 = sadd.s32 %s552_s17, %s551_s22 }
  0x2e   : > { %s553_s18 = sshll.u32 %s206_s23, 2 }
  0x2f   : > { %s208_s10 = scalar_lea.hbm %s1039_s3, %s553_s18 }
  0x30   : > { %s209_s11 = sshll.u32 %s208_s10, 4  ;;  %s210_s11 = int_to_ptr.hbm [resolvable:$true] %s209_s11 }
  0x31   : > { %s716_s24 = sshra.s32 %s210_s11, 4  ;;  %s717_s24 = int_to_ptr.hbm [resolvable:$true] %s716_s24 }
  0x32   : > { %s718_s1 = scalar_lea.hbm %s717_s24, 64  ;;  %p724_p8 = scmp.lt.s32.totalorder %s717_s24, %s1039_s3 }
  0x33   : > { %p719_p3 = scmp.ne.s32.totalorder %s717_s24, %s718_s1  ;;  %p725_p10 = scmp.lt.s32.totalorder %s723_s14, %s718_s1 }
  0x35   : > { %p721_p6 = pnand %p720_p4, %p719_p3  ;;  %p726_p11 = por %p725_p10, %p724_p8 }
  0x37   : > { %p722_p7 = pneg %p721_p6 }
  0x39   : > { %p727_p12 = pnand %p726_p11, %p722_p7 }
  0x3b   : > { %730 = shalt.err (!%p727_p12)
}
  0x3c   : > { %s818_s7 = smov 64   ;;  %s819_s0 = smov 4  }
  0x3d   : > { %621 = dma.hbm_to_vmem [thread:$0]  (!%p937_p13), %s210_s11, 1024, %s212_s21, %s196_s30, %s818_s7, %s818_s7, %s819_s0  }
  0x3e   : > { %231 = sbr.rel (%p950_p2) target bundleno = 264 (0x108), region = 32  ;;  %s233_s22 = sand.u32 (!%p950_p2), 1, %s798_s28  }
  0x3f   : > { %s555_s23 = sshll.u32 (!%p950_p2), %s233_s22, 6  ;;  %s234_s18 = scalar_lea.sflag (!%p950_p2), [#allocation6], %s233_s22 }
  0x40   : > { %s973_s9 = scalar_lea.vmem (!%p950_p2), [#allocation5], %s555_s23 }
  0x43   : > { %781 = dma.done.wait (%p909_p5), %s234_s18, 1024  }
  0x44   : > { %783 = vsyncadd (%p909_p5), %s234_s18, 4294966272  ;;  %s270_s1 = sand.u32 1, %s786_s26   ;;  %s273_s30 = sld [smem:[#allocation4 + %s806_s29]] }
  0x45   : > { %s556_s24 = sshll.u32 %s270_s1, 4  ;;  %s287_s8 = sld [smem:[#allocation3 + %s806_s29]] }
  0x46   : > { %s294_s15 = sld [smem:[#allocation4 + %s806_s29]]  ;;  %s989_s17 = scalar_lea.vmem [#allocation7], %s556_s24 }
  0x4a   : > { %p277_p13 = scmp.lt.s32.totalorder %s273_s30, 0 }
  0x4b   : > { %p288_p0 = scmp.lt.s32.totalorder %s287_s8, 2 }
  0x4c   : > { %s1072_s30 = smov (!%p277_p13, %s273_s30), 0  ;;  %p558_p5 = scmp.ne.s32.totalorder %s294_s15, 0 }
  0x4d   : > { %s1074_s8 = smov (!%p288_p0, %s287_s8), 2  ;;  %s557_s21 = sshll.u32 %s1072_s30, 2 }
  0x4e   : > { %s281_s12 = scalar_lea.vmem %s1038_s2, %s557_s21  ;;  %s290_s14 = scalar_lea.vmem %s1040_s4, %s1074_s8 }
  0x4f   : > { %298 = sbr.rel (%p558_p5) target bundleno = 87 (0x57), region = 40 }
  0x54   : > { %v691_v0 = vld [vmem:[%s290_s14] ss:$0 sm:$0xff] }
  0x55   : > { %303 = vst [vmem:[%s989_s17] sm:$0xff] %v691_v0 }
  0x56   : > { %304 = vst [vmem:[%s989_s17 + $0x8] sm:$0xff] %v691_v0 }
  0x57 PF: > { %v607_v1 = vld [vmem:[%s973_s9 + $0x38] sm:$0xff]  ;;  %v606_v2 = vld [vmem:[%s973_s9 + $0x30] sm:$0xff]  ;;  %v605_v3 = vld [vmem:[%s973_s9 + $0x28] sm:$0xff]  ;;  %s404_s26 = sld [smem:[#allocation3 + %s806_s29]] (%p922_p9) }
  0x58   : > { %379 = vmatpush.bf16.msra.mxu0 %v607_v1  ;;  %v604_v4 = vld [vmem:[%s973_s9 + $0x20] sm:$0xff]  ;;  %v603_v5 = vld [vmem:[%s973_s9 + $0x18] sm:$0xff]  ;;  %v602_v6 = vld [vmem:[%s973_s9 + $0x10] sm:$0xff] }
  0x59   : > { %v601_v7 = vld [vmem:[%s973_s9 + $0x8] sm:$0xff]  ;;  %v600_v8 = vld [vmem:[%s973_s9] sm:$0xff] }
  0x5a   : > { %v599_v9 = vld [vmem:[%s281_s12] sm:$0xff] }
  0x5c   : > { %380 = vmatpush.bf16.msra.mxu0 %v606_v2  ;;  %v305_v10 = vld [vmem:[%s989_s17] sm:$0xff] }
  0x5d   : > { %v306_v13 = vld [vmem:[%s989_s17 + $0x8] sm:$0xff]  ;;  %s596_s19 = sshll.u32 (%p922_p9), %s404_s26, 3 }
  0x5e   : > { %s409_s22 = scalar_lea.vmem (%p922_p9), %s1041_s5, %s596_s19 }
  0x60   : > { %381 = vmatpush.bf16.msra.mxu0 %v605_v3 }
  0x64   : > { %382 = vmatpush.bf16.msra.mxu0 %v604_v4 }
  0x68   : > { %383 = vmatpush.bf16.msra.mxu0 %v603_v5 }
  0x6c   : > { %384 = vmatpush.bf16.msra.mxu0 %v602_v6 }
  0x70   : > { %385 = vmatpush.bf16.msra.mxu0 %v601_v7 }
  0x74   : > { %386 = vmatpush.bf16.msra.mxu0 %v600_v8 }
  0x77   : > { %387 = vmatmul.bf16.vlgmr.msra.gmra.mxu0 %v599_v9 }
  0xf4   : > { %v388_v11 = vpop.f32.mrf.mxu0 }
  0xf5   : > { %v393_v12 = vadd.f32 %v388_v11, %v305_v10 }
  0xf7   : > { %395 = vst [vmem:[%s989_s17] sm:$0xff] %v393_v12 }
  0xfb   : > { %403 = sbr.rel (!%p922_p9) target bundleno = 264 (0x108), region = 44 }
  0xfc   : > { %v390_v14 = vpop.f32.mrf.mxu0 }
  0xfd   : > { %v394_v15 = vadd.f32 %v390_v14, %v306_v13 }
  0xfe   : > { %v440_v16 = vld [vmem:[%s989_s17] sm:$0xff] (%p922_p9) }
  0xff   : > { %396 = vst [vmem:[%s989_s17 + $0x8] sm:$0xff] %v394_v15 }
 0x100   : > { %441 = vst [vmem:[%s409_s22] sm:$0xff] %v440_v16 }
 0x106   : > { %v442_v17 = vld [vmem:[%s989_s17 + $0x8] sm:$0xff] }
 0x107   : > { %443 = vst [vmem:[%s409_s22 + $0x18] sm:$0xff] %v442_v17 }
 0x108 PF: > { %s31_s6 = sadd.s32 1, %s814_s6   ;;  %s1055_s20 = sld [smem:[#allocation14_spill]] }
 0x109   : > { %p28_p1 = scmp.ge.s32.totalorder %s31_s6, 5   ;;  %s1056_s1 = sld [smem:[#allocation17_spill]] }
 0x10a   : > { %s1057_s29 = sld [smem:[#allocation15_spill]]  ;;  %s1059_s26 = smov %s790_s27 }
 0x10b   : > { %s1058_s30 = sld [smem:[#allocation16_spill]]  ;;  %s1060_s27 = smov %s932_s25 }
 0x10c   : > { %s1061_s0 = smov %s798_s28  ;;  %30 = sbr.rel (!%p28_p1) target bundleno = 12 (0xc), region = 120 }
 0x10e   : > { %s1062_s28 = smov %s1055_s20 }
 0x111   :  { %459 = vsyncpa [#allocation6], 1 }
 0x112   :  { %461 = vsyncpa [#allocation6 + $0x1], 1 }

</bundles_post_ra>
